<compile_context>
chip_gen: v7x
topology: tpu7x:2x2x1
jax: 0.10.0
libtpu: 0.0.40
codegen_flags: <defaults>
</compile_context>

<pallas_src>
from functools import partial

import numpy as np
import jax
import jax.numpy as jnp
from jax.experimental import pallas as pl
from jax.experimental.pallas import tpu as pltpu

VMEM_SPEC = pl.BlockSpec(memory_space=pltpu.MemorySpace.VMEM)

# ----------------------------------------------------------------------------
# Network description (a concrete small SMS graph instance)
# ----------------------------------------------------------------------------
IN_CHANNELS = 4
OUT_CHANNELS = 3
KERNEL_SIZE = 3
LENGTH = 16
BATCH = 2
LAST_NODE = 3
BN_EPS = 1e-5

# (from_node, to_node, out_channels_of_edge, dilation or None for Linear1D edge)
# Ordered exactly as the module's action_list (grouped by source node).
EDGES = [
    (0, 1, 3, 1),
    (0, 2, 2, 2),
    (0, 3, 2, None),   # edge into last node -> Linear1D (1x1 conv, bias=False)
    (1, 2, 2, 3),
    (1, 3, 2, None),
    (2, 3, 2, None),
]

# channel_count per node (input channels available at each node)
CHANNEL_COUNT = {0: IN_CHANNELS, 1: 3, 2: 2 + 2, 3: 2 + 2 + 2}
HIDDEN_NODES = tuple(n for n in CHANNEL_COUNT if n != 0)   # nodes with scratch

# TODO(synk): the original module builds its topology from a networkx graph via
# smsnet.edges_source_sink_list / scaling_table; that graph construction has no
# Pallas equivalent and is replicated here as the static EDGES / CHANNEL_COUNT
# metadata (compiled into the kernel as Python constants).


def _build_plan():
    """Static offsets for the packed parameter slabs and node scratch writes."""
    edges = []
    w_row = 0          # row offset in the packed weight slab
    s_col = 0          # column offset in the packed gamma/beta/bias slab
    dst_off = {v: 0 for v in HIDDEN_NODES}
    w_cols = 0
    for (u, v, ch, dil) in EDGES:
        cin = CHANNEL_COUNT[u]
        if v == LAST_NODE:                       # Linear1D, bias=False
            e = dict(kind="linear", name=f"Edge_{u}_{v}", src=u, dst=v,
                     c_in=cin, c_out=ch, w_row=w_row, w_width=cin,
                     dst_off=dst_off[v])
        else:                                    # Conv1DReLU (conv + BN + ReLU)
            e = dict(kind="conv", name=f"Edge_{u}_{v}", src=u, dst=v,
                     c_in=cin, c_out=ch, dil=dil, w_row=w_row,
                     w_width=cin * KERNEL_SIZE,
                     g_col=s_col, b_col=s_col + 1, dst_off=dst_off[v])
            s_col += 2
        w_cols = max(w_cols, e["w_width"])
        w_row += ch
        dst_off[v] += ch
        edges.append(e)
    last = dict(kind="linear", name="Last_Action", src=LAST_NODE,
                c_in=CHANNEL_COUNT[LAST_NODE], c_out=OUT_CHANNELS,
                w_row=w_row, w_width=CHANNEL_COUNT[LAST_NODE], bias_col=s_col)
    w_cols = max(w_cols, last["w_width"])
    w_row += OUT_CHANNELS
    s_col += 1
    max_cout = max([e["c_out"] for e in edges] + [OUT_CHANNELS])
    return edges, last, w_row, w_cols, s_col, max_cout


PLAN_EDGES, PLAN_LAST, W_ROWS, W_COLS, N_SCALE_COLS, MAX_COUT = _build_plan()


def _conv_shifts():
    """All non-zero tap shifts needed by the conv edges (reflect-shift mats)."""
    shifts = set()
    for e in PLAN_EDGES:
        if e["kind"] == "conv":
            d = e["dil"]
            pad = d * (KERNEL_SIZE - 1) // 2
            for k in range(KERNEL_SIZE):
                s = k * d - pad
                if s != 0:
                    shifts.add(s)
    return sorted(shifts)


SHIFTS = _conv_shifts()
SHIFT_IDX = {s: i for i, s in enumerate(SHIFTS)}


# ----------------------------------------------------------------------------
# The fused Pallas kernel
# ----------------------------------------------------------------------------
def _sms_fused_kernel(x_ref, w_ref, s_ref, shift_ref, o_ref, *node_refs,
                      N, L, K, plan_edges, plan_last, eps):
    """Entire SMSNet1D forward.

    x_ref     : (C_in, N*L)                       input, lane-dense, N folded
    w_ref     : (W_ROWS, W_COLS)                  packed weight slab (rows/edge)
    s_ref     : (MAX_COUT, N_SCALE_COLS)          packed gamma/beta/last-bias
    shift_ref : (len(SHIFTS)*N*L, N*L)            block-diag reflect-shift mats
    o_ref     : (N, OUT_CHANNELS, L)              final output, NCL layout
    node_refs : VMEM scratch per hidden node, shape (C_node, N*L)
    """
    nodes = dict(zip(HIDDEN_NODES, node_refs))
    NL = N * L

    def node_slab(node):
        # Node 0 has the same (C, N*L) layout as the hidden-node scratch.
        return x_ref[...] if node == 0 else nodes[node][...]

    def shifted(slab, shift):
        """Reflect-shifted window via one matmul against a constant matrix."""
        if shift == 0:
            return slab
        m = SHIFT_IDX[shift]
        return jnp.dot(slab, shift_ref[m * NL:(m + 1) * NL, :],
                       preferred_element_type=jnp.float32)

    # ---- hidden / linear edges, in action-list order -------------------------
    for e in plan_edges:
        c_in, c_out, r0 = e["c_in"], e["c_out"], e["w_row"]
        src = node_slab(e["src"])                               # (c_in, N*L)
        if e["kind"] == "conv":
            dil = e["dil"]
            pad = dil * (K - 1) // 2
            # Stack the K shifted windows along sublanes -> one MXU dot.
            win = jnp.concatenate(
                [shifted(src, k * dil - pad) for k in range(K)], axis=0)
            acc = jnp.dot(w_ref[r0:r0 + c_out, :K * c_in], win,
                          preferred_element_type=jnp.float32)   # (c_out, N*L)
            # BatchNorm1d with batch statistics (biased variance) + ReLU.
            # Conv bias omitted: exactly cancelled by the batch-mean subtraction.
            # (If the XLU ever saturates these lane reductions could become
            #  dots against a ones column on the idle MXU; not needed here.)
            mean = jnp.mean(acc, axis=1, keepdims=True)
            cen = acc - mean
            var = jnp.mean(cen * cen, axis=1, keepdims=True)
            gamma = s_ref[:c_out, e["g_col"]:e["g_col"] + 1]
            beta = s_ref[:c_out, e["b_col"]:e["b_col"] + 1]
            y = jnp.maximum(cen * jax.lax.rsqrt(var + eps) * gamma + beta, 0.0)
        else:
            # Linear1D (1x1 conv), bias=False for all edges into the last node.
            y = jnp.dot(w_ref[r0:r0 + c_out, :c_in], src,
                        preferred_element_type=jnp.float32)
        # "torch.cat" = write at a static channel offset of the destination node.
        dst = nodes[e["dst"]]
        dst[e["dst_off"]:e["dst_off"] + c_out, :] = y

    # ---- Last_Action: Linear1D(channel_count[last] -> out_channels, bias=True)
    r0, c_in, c_out = plan_last["w_row"], plan_last["c_in"], plan_last["c_out"]
    y = jnp.dot(w_ref[r0:r0 + c_out, :c_in], node_slab(plan_last["src"]),
                preferred_element_type=jnp.float32)
    bcol = plan_last["bias_col"]
    y = y + s_ref[:c_out, bcol:bcol + 1]
    # Write the output already in (N, C_out, L) layout (no wrapper transpose).
    for n in range(N):
        o_ref[n, :, :] = y[:, n * L:(n + 1) * L]


# ----------------------------------------------------------------------------
# One-time host-side packing (NOT called per forward)
# ----------------------------------------------------------------------------
def _build_shift_slab(N, L):
    """Block-diagonal reflect-shift matrices, stacked along rows."""
    NL = N * L
    slab = np.zeros((len(SHIFTS) * NL, NL), np.float32)
    for m, s in enumerate(SHIFTS):
        assert abs(s) < L, "reflect pad must be < L"
        for n in range(N):
            for i in range(L):
                t = i + s
                if t < 0:
                    t = -t
                elif t >= L:
                    t = 2 * (L - 1) - t
                slab[m * NL + n * L + t, n * L + i] = 1.0
    return jnp.asarray(slab)


def pack_params(params, N, L):
    """Pack all edge parameters into 2 flat slabs + the shift slab.

    Call ONCE at init; the jitted forward only consumes the result.
    """
    w_slab = jnp.zeros((W_ROWS, W_COLS), jnp.float32)
    s_slab = jnp.zeros((MAX_COUT, N_SCALE_COLS), jnp.float32)
    for e in PLAN_EDGES:
        p = params[e["name"]]
        r0, co = e["w_row"], e["c_out"]
        if e["kind"] == "conv":
            # layout: w2d[co, k*c_in + ci] = w[co, ci, k]  (matches window stack)
            w2d = jnp.transpose(p["w"], (0, 2, 1)).reshape(co, e["w_width"])
            w_slab = w_slab.at[r0:r0 + co, :e["w_width"]].set(w2d)
            s_slab = s_slab.at[:co, e["g_col"]].set(p["gamma"])
            s_slab = s_slab.at[:co, e["b_col"]].set(p["beta"])
        else:
            w_slab = w_slab.at[r0:r0 + co, :e["w_width"]].set(p["w"])
    p = params["Last_Action"]
    r0, co = PLAN_LAST["w_row"], PLAN_LAST["c_out"]
    w_slab = w_slab.at[r0:r0 + co, :PLAN_LAST["w_width"]].set(p["w"])
    s_slab = s_slab.at[:co, PLAN_LAST["bias_col"]].set(p["b"])
    shift_slab = _build_shift_slab(N, L)
    return w_slab, s_slab, shift_slab


# ----------------------------------------------------------------------------
# Forward wrapper (one pallas_call total)
# ----------------------------------------------------------------------------
def smsnet1d_forward(packed, x):
    """Mirrors SMSNet1D.forward with one fused Pallas kernel."""
    w_slab, s_slab, shift_slab = packed
    N, c_in, L = x.shape
    assert c_in == IN_CHANNELS
    # (N, C, L) -> (C, N*L): one lane-dense slab; node 0 then has the same
    # layout as the hidden-node scratch inside the kernel.
    x2 = jnp.transpose(x, (1, 0, 2)).reshape(c_in, N * L)
    kern = partial(_sms_fused_kernel, N=N, L=L, K=KERNEL_SIZE,
                   plan_edges=PLAN_EDGES, plan_last=PLAN_LAST, eps=BN_EPS)
    # Output is produced directly in (N, C_out, L); no wrapper epilogue ops.
    return pl.pallas_call(
        kern,
        out_shape=jax.ShapeDtypeStruct((N, OUT_CHANNELS, L), jnp.float32),
        in_specs=[VMEM_SPEC, VMEM_SPEC, VMEM_SPEC, VMEM_SPEC],
        out_specs=VMEM_SPEC,
        scratch_shapes=[pltpu.VMEM((CHANNEL_COUNT[n], N * L), jnp.float32)
                        for n in HIDDEN_NODES],
    )(x2, w_slab, s_slab, shift_slab)


# ----------------------------------------------------------------------------
# Deterministic parameter init + pure-JAX reference (for a self-check)
# ----------------------------------------------------------------------------
def init_params(key):
    params = {}
    for e in PLAN_EDGES:
        key, k1, k2, k3 = jax.random.split(key, 4)
        if e["kind"] == "conv":
            params[e["name"]] = {
                # Conv bias intentionally omitted: with batch-statistics BN it
                # is mathematically dead (cancelled by mean subtraction).
                "w": 0.1 * jax.random.normal(
                    k1, (e["c_out"], e["c_in"], KERNEL_SIZE), jnp.float32),
                "gamma": 1.0 + 0.1 * jax.random.normal(k2, (e["c_out"],), jnp.float32),
                "beta": 0.1 * jax.random.normal(k3, (e["c_out"],), jnp.float32),
            }
        else:
            params[e["name"]] = {
                "w": 0.1 * jax.random.normal(k1, (e["c_out"], e["c_in"]), jnp.float32),
            }
    key, k1, k2 = jax.random.split(key, 3)
    params["Last_Action"] = {
        "w": 0.1 * jax.random.normal(
            k1, (OUT_CHANNELS, CHANNEL_COUNT[LAST_NODE]), jnp.float32),
        "b": 0.1 * jax.random.normal(k2, (OUT_CHANNELS,), jnp.float32),
    }
    return params


def _ref_conv_bn_relu(x, w, gamma, beta, dil):
    K = w.shape[2]
    pad = dil * (K - 1) // 2
    xp = jnp.pad(x, ((0, 0), (0, 0), (pad, pad)), mode="reflect")
    L = x.shape[2]
    acc = jnp.zeros((x.shape[0], w.shape[0], L), jnp.float32)
    for k in range(K):
        acc = acc + jnp.einsum("oi,nil->nol", w[:, :, k],
                               xp[:, :, k * dil:k * dil + L])
    mean = acc.mean(axis=(0, 2), keepdims=True)
    var = jnp.mean((acc - mean) ** 2, axis=(0, 2), keepdims=True)
    y = (acc - mean) * jax.lax.rsqrt(var + BN_EPS)
    y = y * gamma.reshape(1, -1, 1) + beta.reshape(1, -1, 1)
    return jnp.maximum(y, 0.0)


def smsnet1d_reference(params, x):
    acc = {n: None for n in CHANNEL_COUNT}
    acc[0] = x
    for e in PLAN_EDGES:
        p = params[e["name"]]
        xin = acc[e["src"]]
        if e["kind"] == "conv":
            out = _ref_conv_bn_relu(xin, p["w"], p["gamma"], p["beta"], e["dil"])
        else:
            out = jnp.einsum("oi,nil->nol", p["w"], xin)
        acc[e["dst"]] = out if acc[e["dst"]] is None else jnp.concatenate(
            [acc[e["dst"]], out], axis=1)
    p = params["Last_Action"]
    return jnp.einsum("oi,nil->nol", p["w"], acc[LAST_NODE]) + p["b"].reshape(1, -1, 1)


if __name__ == "__main__":
    key = jax.random.PRNGKey(0)
    kx, kp = jax.random.split(key)
    x = jax.random.normal(kx, (BATCH, IN_CHANNELS, LENGTH), jnp.float32)
    params = init_params(kp)

    # Pack parameters + reflect-shift matrices ONCE, outside the jitted path.
    packed = pack_params(params, BATCH, LENGTH)

    fwd = jax.jit(smsnet1d_forward)
    y = fwd(packed, x)
    jax.block_until_ready(y)
    assert y.shape == (BATCH, OUT_CHANNELS, LENGTH), y.shape

    y_ref = smsnet1d_reference(params, x)
    err = float(jnp.max(jnp.abs(y - y_ref)))
    assert err < 1e-4, f"mismatch vs pure-JAX reference: {err}"
    print("KERNEL_OK")
</pallas_src>

<mosaic_0001>
module attributes {stable_mosaic.version = 11 : i64} {
  func.func @_sms_fused_kernel(%arg0: memref<4x32xf32, #tpu.memory_space<vmem>>, %arg1: memref<16x12xf32, #tpu.memory_space<vmem>>, %arg2: memref<3x7xf32, #tpu.memory_space<vmem>>, %arg3: memref<192x32xf32, #tpu.memory_space<vmem>>, %arg4: memref<2x3x16xf32, #tpu.memory_space<vmem>>, %arg5: memref<3x32xf32, #tpu.memory_space<vmem>>, %arg6: memref<4x32xf32, #tpu.memory_space<vmem>>, %arg7: memref<6x32xf32, #tpu.memory_space<vmem>>) attributes {dimension_semantics = [], scalar_prefetch = 0 : i64, scratch_operands = 3 : i64, tpu.core_type = #tpu.core_type<tc>} {
    %c0 = arith.constant 0 : index
    %c0_0 = arith.constant 0 : index
    %0 = vector.load %arg0[%c0, %c0_0] : memref<4x32xf32, #tpu.memory_space<vmem>>, vector<4x32xf32>
    %c64 = arith.constant 64 : index
    %c0_1 = arith.constant 0 : index
    %1 = vector.load %arg3[%c64, %c0_1] : memref<192x32xf32, #tpu.memory_space<vmem>>, vector<32x32xf32>
    %cst = arith.constant dense<0.000000e+00> : vector<4x32xf32>
    %2 = tpu.matmul %0, %1, %cst {dimension_numbers = #tpu.dot_dimension_numbers<[1], [0], [0], [1], [0, 0, 1, 1], [], []>} : vector<4x32xf32>, vector<32x32xf32>, vector<4x32xf32> -> vector<4x32xf32>
    %c96 = arith.constant 96 : index
    %c0_2 = arith.constant 0 : index
    %3 = vector.load %arg3[%c96, %c0_2] : memref<192x32xf32, #tpu.memory_space<vmem>>, vector<32x32xf32>
    %cst_3 = arith.constant dense<0.000000e+00> : vector<4x32xf32>
    %4 = tpu.matmul %0, %3, %cst_3 {dimension_numbers = #tpu.dot_dimension_numbers<[1], [0], [0], [1], [0, 0, 1, 1], [], []>} : vector<4x32xf32>, vector<32x32xf32>, vector<4x32xf32> -> vector<4x32xf32>
    %5 = tpu.concatenate %2, %0, %4 in 0 : vector<4x32xf32>, vector<4x32xf32>, vector<4x32xf32> -> vector<12x32xf32>
    %c0_4 = arith.constant 0 : index
    %c0_5 = arith.constant 0 : index
    %6 = vector.load %arg1[%c0_4, %c0_5] : memref<16x12xf32, #tpu.memory_space<vmem>>, vector<3x12xf32>
    %cst_6 = arith.constant dense<0.000000e+00> : vector<3x32xf32>
    %7 = tpu.matmul %6, %5, %cst_6 {dimension_numbers = #tpu.dot_dimension_numbers<[1], [0], [0], [1], [0, 0, 1, 1], [], []>} : vector<3x12xf32>, vector<12x32xf32>, vector<3x32xf32> -> vector<3x32xf32>
    %cst_7 = arith.constant dense<0.000000e+00> : vector<3xf32>
    %8 = vector.multi_reduction <add>, %7, %cst_7 [1] : vector<3x32xf32> to vector<3xf32>
    %9 = vector.shape_cast %8 : vector<3xf32> to vector<3x1xf32>
    %cst_8 = arith.constant 3.200000e+01 : f32
    %10 = vector.broadcast %cst_8 : f32 to vector<3x1xf32>
    %11 = arith.divf %9, %10 : vector<3x1xf32>
    %12 = vector.broadcast %11 : vector<3x1xf32> to vector<3x32xf32>
    %13 = arith.subf %7, %12 : vector<3x32xf32>
    %14 = arith.mulf %13, %13 : vector<3x32xf32>
    %cst_9 = arith.constant dense<0.000000e+00> : vector<3xf32>
    %15 = vector.multi_reduction <add>, %14, %cst_9 [1] : vector<3x32xf32> to vector<3xf32>
    %16 = vector.shape_cast %15 : vector<3xf32> to vector<3x1xf32>
    %cst_10 = arith.constant 3.200000e+01 : f32
    %17 = vector.broadcast %cst_10 : f32 to vector<3x1xf32>
    %18 = arith.divf %16, %17 : vector<3x1xf32>
    %c0_11 = arith.constant 0 : index
    %c0_12 = arith.constant 0 : index
    %19 = vector.load %arg2[%c0_11, %c0_12] : memref<3x7xf32, #tpu.memory_space<vmem>>, vector<3x1xf32>
    %c0_13 = arith.constant 0 : index
    %c1 = arith.constant 1 : index
    %20 = vector.load %arg2[%c0_13, %c1] : memref<3x7xf32, #tpu.memory_space<vmem>>, vector<3x1xf32>
    %cst_14 = arith.constant 9.99999974E-6 : f32
    %21 = vector.broadcast %cst_14 : f32 to vector<3x1xf32>
    %22 = arith.addf %18, %21 : vector<3x1xf32>
    %23 = math.rsqrt %22 : vector<3x1xf32>
    %24 = vector.broadcast %23 : vector<3x1xf32> to vector<3x32xf32>
    %25 = arith.mulf %13, %24 : vector<3x32xf32>
    %26 = vector.broadcast %19 : vector<3x1xf32> to vector<3x32xf32>
    %27 = arith.mulf %25, %26 : vector<3x32xf32>
    %28 = vector.broadcast %20 : vector<3x1xf32> to vector<3x32xf32>
    %29 = arith.addf %27, %28 : vector<3x32xf32>
    %cst_15 = arith.constant 0.000000e+00 : f32
    %30 = vector.broadcast %cst_15 : f32 to vector<3x32xf32>
    %31 = arith.maximumf %29, %30 : vector<3x32xf32>
    %c0_16 = arith.constant 0 : index
    %c0_17 = arith.constant 0 : index
    %32 = vector.load %arg5[%c0_16, %c0_17] : memref<3x32xf32, #tpu.memory_space<vmem>>, vector<3x32xf32>
    tpu.vector_store %arg5[%c0_16, %c0_17], %31 {strides = array<i32>} : memref<3x32xf32, #tpu.memory_space<vmem>>, vector<3x32xf32>,
    %c0_18 = arith.constant 0 : index
    %c0_19 = arith.constant 0 : index
    %33 = vector.load %arg0[%c0_18, %c0_19] : memref<4x32xf32, #tpu.memory_space<vmem>>, vector<4x32xf32>
    %c32 = arith.constant 32 : index
    %c0_20 = arith.constant 0 : index
    %34 = vector.load %arg3[%c32, %c0_20] : memref<192x32xf32, #tpu.memory_space<vmem>>, vector<32x32xf32>
    %cst_21 = arith.constant dense<0.000000e+00> : vector<4x32xf32>
    %35 = tpu.matmul %33, %34, %cst_21 {dimension_numbers = #tpu.dot_dimension_numbers<[1], [0], [0], [1], [0, 0, 1, 1], [], []>} : vector<4x32xf32>, vector<32x32xf32>, vector<4x32xf32> -> vector<4x32xf32>
    %c128 = arith.constant 128 : index
    %c0_22 = arith.constant 0 : index
    %36 = vector.load %arg3[%c128, %c0_22] : memref<192x32xf32, #tpu.memory_space<vmem>>, vector<32x32xf32>
    %cst_23 = arith.constant dense<0.000000e+00> : vector<4x32xf32>
    %37 = tpu.matmul %33, %36, %cst_23 {dimension_numbers = #tpu.dot_dimension_numbers<[1], [0], [0], [1], [0, 0, 1, 1], [], []>} : vector<4x32xf32>, vector<32x32xf32>, vector<4x32xf32> -> vector<4x32xf32>
    %38 = tpu.concatenate %35, %33, %37 in 0 : vector<4x32xf32>, vector<4x32xf32>, vector<4x32xf32> -> vector<12x32xf32>
    %c3 = arith.constant 3 : index
    %c0_24 = arith.constant 0 : index
    %39 = vector.load %arg1[%c3, %c0_24] : memref<16x12xf32, #tpu.memory_space<vmem>>, vector<2x12xf32>
    %cst_25 = arith.constant dense<0.000000e+00> : vector<2x32xf32>
    %40 = tpu.matmul %39, %38, %cst_25 {dimension_numbers = #tpu.dot_dimension_numbers<[1], [0], [0], [1], [0, 0, 1, 1], [], []>} : vector<2x12xf32>, vector<12x32xf32>, vector<2x32xf32> -> vector<2x32xf32>
    %cst_26 = arith.constant dense<0.000000e+00> : vector<2xf32>
    %41 = vector.multi_reduction <add>, %40, %cst_26 [1] : vector<2x32xf32> to vector<2xf32>
    %42 = vector.shape_cast %41 : vector<2xf32> to vector<2x1xf32>
    %cst_27 = arith.constant 3.200000e+01 : f32
    %43 = vector.broadcast %cst_27 : f32 to vector<2x1xf32>
    %44 = arith.divf %42, %43 : vector<2x1xf32>
    %45 = vector.broadcast %44 : vector<2x1xf32> to vector<2x32xf32>
    %46 = arith.subf %40, %45 : vector<2x32xf32>
    %47 = arith.mulf %46, %46 : vector<2x32xf32>
    %cst_28 = arith.constant dense<0.000000e+00> : vector<2xf32>
    %48 = vector.multi_reduction <add>, %47, %cst_28 [1] : vector<2x32xf32> to vector<2xf32>
    %49 = vector.shape_cast %48 : vector<2xf32> to vector<2x1xf32>
    %cst_29 = arith.constant 3.200000e+01 : f32
    %50 = vector.broadcast %cst_29 : f32 to vector<2x1xf32>
    %51 = arith.divf %49, %50 : vector<2x1xf32>
    %c0_30 = arith.constant 0 : index
    %c2 = arith.constant 2 : index
    %52 = vector.load %arg2[%c0_30, %c2] : memref<3x7xf32, #tpu.memory_space<vmem>>, vector<2x1xf32>
    %c0_31 = arith.constant 0 : index
    %c3_32 = arith.constant 3 : index
    %53 = vector.load %arg2[%c0_31, %c3_32] : memref<3x7xf32, #tpu.memory_space<vmem>>, vector<2x1xf32>
    %cst_33 = arith.constant 9.99999974E-6 : f32
    %54 = vector.broadcast %cst_33 : f32 to vector<2x1xf32>
    %55 = arith.addf %51, %54 : vector<2x1xf32>
    %56 = math.rsqrt %55 : vector<2x1xf32>
    %57 = vector.broadcast %56 : vector<2x1xf32> to vector<2x32xf32>
    %58 = arith.mulf %46, %57 : vector<2x32xf32>
    %59 = vector.broadcast %52 : vector<2x1xf32> to vector<2x32xf32>
    %60 = arith.mulf %58, %59 : vector<2x32xf32>
    %61 = vector.broadcast %53 : vector<2x1xf32> to vector<2x32xf32>
    %62 = arith.addf %60, %61 : vector<2x32xf32>
    %cst_34 = arith.constant 0.000000e+00 : f32
    %63 = vector.broadcast %cst_34 : f32 to vector<2x32xf32>
    %64 = arith.maximumf %62, %63 : vector<2x32xf32>
    %c0_35 = arith.constant 0 : index
    %c0_36 = arith.constant 0 : index
    %65 = vector.load %arg6[%c0_35, %c0_36] : memref<4x32xf32, #tpu.memory_space<vmem>>, vector<2x32xf32>
    tpu.vector_store %arg6[%c0_35, %c0_36], %64 {strides = array<i32>} : memref<4x32xf32, #tpu.memory_space<vmem>>, vector<2x32xf32>,
    %c0_37 = arith.constant 0 : index
    %c0_38 = arith.constant 0 : index
    %66 = vector.load %arg0[%c0_37, %c0_38] : memref<4x32xf32, #tpu.memory_space<vmem>>, vector<4x32xf32>
    %c5 = arith.constant 5 : index
    %c0_39 = arith.constant 0 : index
    %67 = vector.load %arg1[%c5, %c0_39] : memref<16x12xf32, #tpu.memory_space<vmem>>, vector<2x4xf32>
    %cst_40 = arith.constant dense<0.000000e+00> : vector<2x32xf32>
    %68 = tpu.matmul %67, %66, %cst_40 {dimension_numbers = #tpu.dot_dimension_numbers<[1], [0], [0], [1], [0, 0, 1, 1], [], []>} : vector<2x4xf32>, vector<4x32xf32>, vector<2x32xf32> -> vector<2x32xf32>
    %c0_41 = arith.constant 0 : index
    %c0_42 = arith.constant 0 : index
    %69 = vector.load %arg7[%c0_41, %c0_42] : memref<6x32xf32, #tpu.memory_space<vmem>>, vector<2x32xf32>
    tpu.vector_store %arg7[%c0_41, %c0_42], %68 {strides = array<i32>} : memref<6x32xf32, #tpu.memory_space<vmem>>, vector<2x32xf32>,
    %c0_43 = arith.constant 0 : index
    %c0_44 = arith.constant 0 : index
    %70 = vector.load %arg5[%c0_43, %c0_44] : memref<3x32xf32, #tpu.memory_space<vmem>>, vector<3x32xf32>
    %c0_45 = arith.constant 0 : index
    %c0_46 = arith.constant 0 : index
    %71 = vector.load %arg3[%c0_45, %c0_46] : memref<192x32xf32, #tpu.memory_space<vmem>>, vector<32x32xf32>
    %cst_47 = arith.constant dense<0.000000e+00> : vector<3x32xf32>
    %72 = tpu.matmul %70, %71, %cst_47 {dimension_numbers = #tpu.dot_dimension_numbers<[1], [0], [0], [1], [0, 0, 1, 1], [], []>} : vector<3x32xf32>, vector<32x32xf32>, vector<3x32xf32> -> vector<3x32xf32>
    %c160 = arith.constant 160 : index
    %c0_48 = arith.constant 0 : index
    %73 = vector.load %arg3[%c160, %c0_48] : memref<192x32xf32, #tpu.memory_space<vmem>>, vector<32x32xf32>
    %cst_49 = arith.constant dense<0.000000e+00> : vector<3x32xf32>
    %74 = tpu.matmul %70, %73, %cst_49 {dimension_numbers = #tpu.dot_dimension_numbers<[1], [0], [0], [1], [0, 0, 1, 1], [], []>} : vector<3x32xf32>, vector<32x32xf32>, vector<3x32xf32> -> vector<3x32xf32>
    %75 = tpu.concatenate %72, %70, %74 in 0 : vector<3x32xf32>, vector<3x32xf32>, vector<3x32xf32> -> vector<9x32xf32>
    %c7 = arith.constant 7 : index
    %c0_50 = arith.constant 0 : index
    %76 = vector.load %arg1[%c7, %c0_50] : memref<16x12xf32, #tpu.memory_space<vmem>>, vector<2x9xf32>
    %cst_51 = arith.constant dense<0.000000e+00> : vector<2x32xf32>
    %77 = tpu.matmul %76, %75, %cst_51 {dimension_numbers = #tpu.dot_dimension_numbers<[1], [0], [0], [1], [0, 0, 1, 1], [], []>} : vector<2x9xf32>, vector<9x32xf32>, vector<2x32xf32> -> vector<2x32xf32>
    %cst_52 = arith.constant dense<0.000000e+00> : vector<2xf32>
    %78 = vector.multi_reduction <add>, %77, %cst_52 [1] : vector<2x32xf32> to vector<2xf32>
    %79 = vector.shape_cast %78 : vector<2xf32> to vector<2x1xf32>
    %cst_53 = arith.constant 3.200000e+01 : f32
    %80 = vector.broadcast %cst_53 : f32 to vector<2x1xf32>
    %81 = arith.divf %79, %80 : vector<2x1xf32>
    %82 = vector.broadcast %81 : vector<2x1xf32> to vector<2x32xf32>
    %83 = arith.subf %77, %82 : vector<2x32xf32>
    %84 = arith.mulf %83, %83 : vector<2x32xf32>
    %cst_54 = arith.constant dense<0.000000e+00> : vector<2xf32>
    %85 = vector.multi_reduction <add>, %84, %cst_54 [1] : vector<2x32xf32> to vector<2xf32>
    %86 = vector.shape_cast %85 : vector<2xf32> to vector<2x1xf32>
    %cst_55 = arith.constant 3.200000e+01 : f32
    %87 = vector.broadcast %cst_55 : f32 to vector<2x1xf32>
    %88 = arith.divf %86, %87 : vector<2x1xf32>
    %c0_56 = arith.constant 0 : index
    %c4 = arith.constant 4 : index
    %89 = vector.load %arg2[%c0_56, %c4] : memref<3x7xf32, #tpu.memory_space<vmem>>, vector<2x1xf32>
    %c0_57 = arith.constant 0 : index
    %c5_58 = arith.constant 5 : index
    %90 = vector.load %arg2[%c0_57, %c5_58] : memref<3x7xf32, #tpu.memory_space<vmem>>, vector<2x1xf32>
    %cst_59 = arith.constant 9.99999974E-6 : f32
    %91 = vector.broadcast %cst_59 : f32 to vector<2x1xf32>
    %92 = arith.addf %88, %91 : vector<2x1xf32>
    %93 = math.rsqrt %92 : vector<2x1xf32>
    %94 = vector.broadcast %93 : vector<2x1xf32> to vector<2x32xf32>
    %95 = arith.mulf %83, %94 : vector<2x32xf32>
    %96 = vector.broadcast %89 : vector<2x1xf32> to vector<2x32xf32>
    %97 = arith.mulf %95, %96 : vector<2x32xf32>
    %98 = vector.broadcast %90 : vector<2x1xf32> to vector<2x32xf32>
    %99 = arith.addf %97, %98 : vector<2x32xf32>
    %cst_60 = arith.constant 0.000000e+00 : f32
    %100 = vector.broadcast %cst_60 : f32 to vector<2x32xf32>
    %101 = arith.maximumf %99, %100 : vector<2x32xf32>
    %c2_61 = arith.constant 2 : index
    %c0_62 = arith.constant 0 : index
    %102 = vector.load %arg6[%c2_61, %c0_62] : memref<4x32xf32, #tpu.memory_space<vmem>>, vector<2x32xf32>
    tpu.vector_store %arg6[%c2_61, %c0_62], %101 {strides = array<i32>} : memref<4x32xf32, #tpu.memory_space<vmem>>, vector<2x32xf32>,
    %c0_63 = arith.constant 0 : index
    %c0_64 = arith.constant 0 : index
    %103 = vector.load %arg5[%c0_63, %c0_64] : memref<3x32xf32, #tpu.memory_space<vmem>>, vector<3x32xf32>
    %c9 = arith.constant 9 : index
    %c0_65 = arith.constant 0 : index
    %104 = vector.load %arg1[%c9, %c0_65] : memref<16x12xf32, #tpu.memory_space<vmem>>, vector<2x3xf32>
    %cst_66 = arith.constant dense<0.000000e+00> : vector<2x32xf32>
    %105 = tpu.matmul %104, %103, %cst_66 {dimension_numbers = #tpu.dot_dimension_numbers<[1], [0], [0], [1], [0, 0, 1, 1], [], []>} : vector<2x3xf32>, vector<3x32xf32>, vector<2x32xf32> -> vector<2x32xf32>
    %c2_67 = arith.constant 2 : index
    %c0_68 = arith.constant 0 : index
    %106 = vector.load %arg7[%c2_67, %c0_68] : memref<6x32xf32, #tpu.memory_space<vmem>>, vector<2x32xf32>
    tpu.vector_store %arg7[%c2_67, %c0_68], %105 {strides = array<i32>} : memref<6x32xf32, #tpu.memory_space<vmem>>, vector<2x32xf32>,
    %c0_69 = arith.constant 0 : index
    %c0_70 = arith.constant 0 : index
    %107 = vector.load %arg6[%c0_69, %c0_70] : memref<4x32xf32, #tpu.memory_space<vmem>>, vector<4x32xf32>
    %c11 = arith.constant 11 : index
    %c0_71 = arith.constant 0 : index
    %108 = vector.load %arg1[%c11, %c0_71] : memref<16x12xf32, #tpu.memory_space<vmem>>, vector<2x4xf32>
    %cst_72 = arith.constant dense<0.000000e+00> : vector<2x32xf32>
    %109 = tpu.matmul %108, %107, %cst_72 {dimension_numbers = #tpu.dot_dimension_numbers<[1], [0], [0], [1], [0, 0, 1, 1], [], []>} : vector<2x4xf32>, vector<4x32xf32>, vector<2x32xf32> -> vector<2x32xf32>
    %c4_73 = arith.constant 4 : index
    %c0_74 = arith.constant 0 : index
    %110 = vector.load %arg7[%c4_73, %c0_74] : memref<6x32xf32, #tpu.memory_space<vmem>>, vector<2x32xf32>
    tpu.vector_store %arg7[%c4_73, %c0_74], %109 {strides = array<i32>} : memref<6x32xf32, #tpu.memory_space<vmem>>, vector<2x32xf32>,
    %c13 = arith.constant 13 : index
    %c0_75 = arith.constant 0 : index
    %111 = vector.load %arg1[%c13, %c0_75] : memref<16x12xf32, #tpu.memory_space<vmem>>, vector<3x6xf32>
    %c0_76 = arith.constant 0 : index
    %c0_77 = arith.constant 0 : index
    %112 = vector.load %arg7[%c0_76, %c0_77] : memref<6x32xf32, #tpu.memory_space<vmem>>, vector<6x32xf32>
    %cst_78 = arith.constant dense<0.000000e+00> : vector<3x32xf32>
    %113 = tpu.matmul %111, %112, %cst_78 {dimension_numbers = #tpu.dot_dimension_numbers<[1], [0], [0], [1], [0, 0, 1, 1], [], []>} : vector<3x6xf32>, vector<6x32xf32>, vector<3x32xf32> -> vector<3x32xf32>
    %c0_79 = arith.constant 0 : index
    %c6 = arith.constant 6 : index
    %114 = vector.load %arg2[%c0_79, %c6] : memref<3x7xf32, #tpu.memory_space<vmem>>, vector<3x1xf32>
    %115 = vector.broadcast %114 : vector<3x1xf32> to vector<3x32xf32>
    %116 = arith.addf %113, %115 : vector<3x32xf32>
    %117 = vector.extract_strided_slice %116 {offsets = [0, 0], sizes = [3, 16], strides = [1, 1]} : vector<3x32xf32> to vector<3x16xf32>
    %c0_80 = arith.constant 0 : index
    %c0_81 = arith.constant 0 : index
    %c0_82 = arith.constant 0 : index
    %118 = vector.load %arg4[%c0_80, %c0_81, %c0_82] : memref<2x3x16xf32, #tpu.memory_space<vmem>>, vector<1x3x16xf32>
    %119 = vector.shape_cast %118 : vector<1x3x16xf32> to vector<3x16xf32>
    %120 = vector.shape_cast %117 : vector<3x16xf32> to vector<1x3x16xf32>
    tpu.vector_store %arg4[%c0_80, %c0_81, %c0_82], %120 {strides = array<i32>} : memref<2x3x16xf32, #tpu.memory_space<vmem>>, vector<1x3x16xf32>,
    %121 = vector.extract_strided_slice %116 {offsets = [0, 16], sizes = [3, 16], strides = [1, 1]} : vector<3x32xf32> to vector<3x16xf32>
    %c1_83 = arith.constant 1 : index
    %c0_84 = arith.constant 0 : index
    %c0_85 = arith.constant 0 : index
    %122 = vector.load %arg4[%c1_83, %c0_84, %c0_85] : memref<2x3x16xf32, #tpu.memory_space<vmem>>, vector<1x3x16xf32>
    %123 = vector.shape_cast %122 : vector<1x3x16xf32> to vector<3x16xf32>
    %124 = vector.shape_cast %121 : vector<3x16xf32> to vector<1x3x16xf32>
    tpu.vector_store %arg4[%c1_83, %c0_84, %c0_85], %124 {strides = array<i32>} : memref<2x3x16xf32, #tpu.memory_space<vmem>>, vector<1x3x16xf32>,
    return
  }
}

</mosaic_0001>

<bundles_post_ra>
// kernel: smsnet1d_forward.1
= control target key start
LH: loop header
LB: loop body
LE: loop exit
PB: predicated region body
PF: predicated region fallthrough
CT: control target
= control target key end

     0   :  { %v1392_v0 = vmov 0.0|0.0   ;;  %vm1393_vm0 = vmmov 0   ;;  %v1394_v8 = vmov 0.0   ;;  %vm22_vm1 = vcmask 261120   ;;  %s1635_s3 = inlined_call_operand.vmem [shape: f32[192,32], index: 3, kind: input, shape index: {}]   ;;  %s1636_s0 = inlined_call_operand.vmem [shape: f32[4,32], index: 0, kind: input, shape index: {}]   ;;  %s1637_s1 = inlined_call_operand.vmem [shape: f32[16,12], index: 1, kind: input, shape index: {}]   ;;  %s1638_s2 = inlined_call_operand.vmem [shape: f32[3,7], index: 2, kind: input, shape index: {}]   ;;  %s1639_s4 = inlined_call_operand.vmem [shape: f32[2,3,16], index: 4, kind: output, shape index: {}]  }
   0x1   :  { %1318 = vmatprep.subr.bf16.mxu0 %v1392_v0  ;;  %1324 = vmatprep.subr.bf16.mxu1 %v1392_v0  ;;  %v18_v1 = vld [vmem:[%s1635_s3 + $0x40] sm:$0xff]  ;;  %v19_v2 = vld [vmem:[%s1635_s3 + $0x48] sm:$0xff]  ;;  %v20_v6 = vld [vmem:[%s1635_s3 + $0x50] sm:$0xff]  ;;  %vm172_vm2 = vcmask 1043456   ;;  %vm1395_vm3 = vmmov 1   ;;  %vm175_vm5 = vcmask 97280  }
   0x2   :  { %v96_v3 = vld [vmem:[%s1635_s3 + $0x60] sm:$0xff]  ;;  %v1319_v4 = vpack.c.bf16 %v19_v2, %v18_v1  ;;  %v97_v5 = vld [vmem:[%s1635_s3 + $0x68] sm:$0xff]  ;;  %v21_v7 = vld [vmem:[%s1635_s3 + $0x58] sm:$0xff]  ;;  %1219 = vmatprep.mubr.msk.f32.mxu0 %vm1393_vm0, %v1394_v8  ;;  %1230 = vmatprep.mubr.msk.f32.mxu1 %vm1393_vm0, %v1394_v8  ;;  %vm252_vm6 = vcmask 256000   ;;  %v1396_v48 = vmov 0   ;;  %v1397_v50 = vmov 1  }
   0x3   :  { %v1325_v9 = vpack.c.bf16 %v97_v5, %v96_v3  ;;  %v98_v10 = vld [vmem:[%s1635_s3 + $0x70] sm:$0xff]  ;;  %v99_v11 = vld [vmem:[%s1635_s3 + $0x78] sm:$0xff]  ;;  %v1322_v12 = vpack.c.bf16 %v21_v7, %v20_v6  ;;  %v17_v14 = vld [vmem:[%s1636_s0] sm:$0xf]  ;;  %1378 = vset.pattern.permute.xlu1 %v1396_v48  ;;  %vm543_vm7 = vcmask 31744   ;;  %vm513_vm8 = vcmask 254976  }
   0x4   :  { %1320 = vmatpush3.bf16.msra.mxu0 %v1319_v4  ;;  %v1328_v13 = vpack.c.bf16 %v99_v11, %v98_v10  ;;  %v282_v15 = vld [vmem:[%s1635_s3 + $0x20] sm:$0xff]  ;;  %v283_v16 = vld [vmem:[%s1635_s3 + $0x28] sm:$0xff]  ;;  %v284_v18 = vld [vmem:[%s1635_s3 + $0x30] sm:$0xff]  ;;  %v170_v22 = vrot.slane %v17_v14, 4  ;;  %v1398_v11 = vmov 2   ;;  %vm778_vm9 = vcmask 1042432  }
   0x5   :  { %1326 = vmatpush3.bf16.msra.mxu1 %v1325_v9  ;;  %1321 = vmatprep.subr.bf16.mxu0 %v1392_v0  ;;  %v1335_v17 = vpack.c.bf16 %v283_v16, %v282_v15  ;;  %v285_v19 = vld [vmem:[%s1635_s3 + $0x38] sm:$0xff]  ;;  %v281_v21 = vld [vmem:[%s1636_s0] sm:$0xf]  ;;  %vm1495_vm4 = vmpackc.low %vm172_vm2, %vm1395_vm3  ;;  %vm780_vm10 = vcmask 1045504   ;;  %vm787_vm11 = vcmask 1040384   ;;  %vm783_vm13 = vcmask 72704  }
   0x6   :  { %1327 = vmatprep.subr.bf16.mxu1 %v1392_v0  ;;  %v1338_v20 = vpack.c.bf16 %v285_v19, %v284_v18  ;;  %v359_v28 = vld [vmem:[%s1635_s3 + $0x80] sm:$0xff]  ;;  %v360_v29 = vld [vmem:[%s1635_s3 + $0x88] sm:$0xff]  ;;  %v361_v34 = vld [vmem:[%s1635_s3 + $0x90] sm:$0xff]  ;;  %v433_v42 = vrot.slane %v281_v21, 4  ;;  %1380 = vset.pattern.permute.xlu0 %v1398_v11  ;;  %vm889_vm14 = vcmask 23552   ;;  %vm1054_vm15 = vcmask 48128  }
   0x7   :  { %v174_v32 = vld [vmem:[%s1637_s1] sm:$0x7]  ;;  %v1341_v33 = vpack.c.bf16 %v360_v29, %v359_v28  ;;  %v362_v35 = vld [vmem:[%s1635_s3 + $0x98] sm:$0xff]  ;;  %v436_v47 = vld [vmem:[%s1637_s1 + $0x3] sm:$0x3] }
   0x8   :  { %1323 = vmatpush3.bf16.msra.mxu0 %v1322_v12  ;;  %v1344_v36 = vpack.c.bf16 %v362_v35, %v361_v34  ;;  %v264_v49 = vld [vmem:[%s1638_s2] sm:$0x7]  ;;  %v700_v58 = vld [vmem:[%s1635_s3 + $0xa8] sm:$0xff]  ;;  %v542_v62 = vld [vmem:[%s1637_s1 + $0x5] sm:$0x3] }
   0x9   :  { %1329 = vmatpush3.bf16.msra.mxu1 %v1328_v13  ;;  %1330 = vmatprep.subr.bf16.mxu0 %v1392_v0  ;;  %v541_v56 = vld [vmem:[%s1636_s0] sm:$0xf]  ;;  %v623_v61 = vld [vmem:[%s1635_s3 + $0x8] sm:$0xff]  ;;  %v701_v1 = vld [vmem:[%s1635_s3 + $0xb0] sm:$0xff] }
   0xa   :  { %1334 = vmatprep.subr.bf16.mxu1 %v1392_v0  ;;  %270 = vperm.xlu1 %1378, %v264_v49   ;;  %v699_v57 = vld [vmem:[%s1635_s3 + $0xa0] sm:$0xff]  ;;  %v702_v2 = vld [vmem:[%s1635_s3 + $0xb8] sm:$0xff]  ;;  %v624_v3 = vld [vmem:[%s1635_s3 + $0x10] sm:$0xff] }
   0xb   :  { %1220 = vmatmul.mubr.msk.f32.vlgmr.msra.gmra.mrb[0].mxu0 %vm22_vm1, %v17_v14  ;;  %v1357_v59 = vpack.c.bf16 %v700_v58, %v699_v57  ;;  %v622_v60 = vld [vmem:[%s1635_s3] sm:$0xff]  ;;  %v625_v4 = vld [vmem:[%s1635_s3 + $0x18] sm:$0xff]  ;;  %v1360_v5 = vpack.c.bf16 %v702_v2, %v701_v1  ;;  %vm1364_vm12 = vmpackc.low %vm787_vm11, %vm1395_vm3 }
   0xc   :  { %1231 = vmatmul.mubr.msk.f32.vlgmr.msra.gmra.mrb[0].mxu1 %vm22_vm1, %v17_v14  ;;  %1237 = vmatprep.mubr.msk.f32.mxu0 %vm1393_vm0, %v1394_v8  ;;  %v1351_v63 = vpack.c.bf16 %v623_v61, %v622_v60  ;;  %v1354_v6 = vpack.c.bf16 %v625_v4, %v624_v3  ;;  %v524_v28 = vld [vmem:[%s1638_s2] sm:$0x3]  ;;  %v888_v1 = vld [vmem:[%s1637_s1 + $0x9] sm:$0x3] }
   0xd   :  { %1248 = vmatprep.mubr.msk.f32.mxu1 %vm1393_vm0, %v1394_v8  ;;  %1336 = vmatpush3.bf16.msra.mxu1 %v1335_v17 }
   0xe   :  { %1337 = vmatprep.subr.bf16.mxu1 %v1392_v0  ;;  %1379 = vset.pattern.permute.xlu1 %v1397_v50 }
   0xf   :  { %275 = vperm.xlu1 %1379, %v264_v49  }
  0x11   :  { %1339 = vmatpush3.bf16.msra.mxu1 %v1338_v20 }
  0x12   :  { %1346 = vmatprep.subr.bf16.mxu1 %v1392_v0 }
  0x14   :  { %1249 = vmatmul.mubr.msk.f32.vlgmr.msra.gmra.mrb[2].mxu1 %vm22_vm1, %v281_v21 }
  0x15   :  { %1266 = vmatprep.mubr.msk.f32.mxu1 %vm1393_vm0, %v1394_v8 }
  0x89   :  { %v271_v15 = vpop.permute.xlu1 %270 }
  0x8e   :  { %v276_v18 = vpop.permute.xlu1 %275 }
  0xde   :  { %v92_v23 = vpop.f32.mrb[0].mxu0 }
  0xdf   :  { %v166_v24 = vpop.f32.mrb[0].mxu1  ;;  %v173_v25 = vsel %vm172_vm2, %v92_v23, %v170_v22  ;;  %v1221_v26 = vpop.f32.mrb[1].mxu0 }
  0xe0   :  { %v1331_v30 = vpack.c.bf16 %v166_v24, %v173_v25  ;;  %v1232_v31 = vpop.f32.mrb[1].mxu1 }
  0xe2   :  { %1333 = vmatpush3.bf16.msk.msra.mxu0 %vm1495_vm4, %v1331_v30 }
  0xe3   :  { %1340 = vmatprep.subr.bf16.mxu0 %v1392_v0 }
  0xe5   :  { %1238 = vmatmul.mubr.msk.f32.vlgmr.msra.gmra.mrb[2].mxu0 %vm175_vm5, %v174_v32 }
  0xe6   :  { %1342 = vmatpush3.bf16.msra.mxu0 %v1341_v33  ;;  %1259 = vmatprep.mubr.msk.f32.mxu0 %vm1393_vm0, %v1394_v8 }
  0xe7   :  { %1343 = vmatprep.subr.bf16.mxu0 %v1392_v0  ;;  %v355_v37 = vpop.f32.mrb[2].mxu1 }
  0xe8   :  { %v1250_v38 = vpop.f32.mrb[3].mxu1  ;;  %v435_v43 = vsel %vm172_vm2, %v355_v37, %v433_v42 }
  0xea   :  { %1345 = vmatpush3.bf16.msra.mxu0 %v1344_v36 }
  0xeb   :  { %1269 = vmatprep.subr.mxu0 %v1394_v8 }
  0xed   :  { %1260 = vmatmul.mubr.msk.f32.vlgmr.msra.gmra.mrb[4].mxu0 %vm22_vm1, %v281_v21 }
  0xee   :  { %1271 = vmatprep.mubr.msk.f32.mxu0 %vm1393_vm0, %v1394_v8  ;;  %1270 = vmatpush3.msk.msra.mxu0 %vm172_vm2, %v541_v56 }
  0xef   :  { %1356 = vmatprep.subr.bf16.mxu0 %v1392_v0 }
  0xf1   :  { %1272 = vmatmul.mubr.msk.f32.vlgmr.msra.gmra.mrb[6].mxu0 %vm543_vm7, %v542_v62 }
  0xf2   :  { %1358 = vmatpush3.bf16.msra.mxu0 %v1357_v59  ;;  %1293 = vmatprep.mubr.msk.f32.mxu0 %vm1393_vm0, %v1394_v8 }
  0xf3   :  { %1359 = vmatprep.subr.bf16.mxu0 %v1392_v0 }
  0xf6   :  { %1361 = vmatpush3.bf16.msra.mxu0 %v1360_v5 }
  0xf7   :  { %1303 = vmatprep.subr.mxu0 %v1394_v8 }
 0x1b8   :  { %v248_v39 = vpop.f32.mrb[2].mxu0 }
 0x1b9   :  { %v1239_v40 = vpop.f32.mrb[3].mxu0  ;;  %v253_v41 = vsel %vm252_vm6, %v248_v39, 0.0 }
 0x1ba   :  { %254 = vadd.xlane.f32.xlu0 %v253_v41  ;;  %v782_v40 = vld [vmem:[%s1637_s1 + $0x7] sm:$0x3]  ;;  %v1399_v41 = vmov 4  }
 0x1bb   :  { %1381 = vset.pattern.permute.xlu1 %v1399_v41 }
 0x1c0   :  { %v429_v44 = vpop.f32.mrb[4].mxu0 }
 0x1c1   :  { %v1347_v45 = vpack.c.bf16 %v429_v44, %v435_v43  ;;  %v1261_v46 = vpop.f32.mrb[5].mxu0 }
 0x1c2   :  { %v1400_v46 = vmov 3  }
 0x1c3   :  { %1349 = vmatpush3.bf16.msk.msra.mxu1 %vm1495_vm4, %v1347_v45  ;;  %v870_v45 = vld [vmem:[%s1638_s2] sm:$0x3] }
 0x1c4   :  { %1350 = vmatprep.subr.bf16.mxu1 %v1392_v0  ;;  %v616_v29 = vpop.f32.mrb[6].mxu0 }
 0x1c5   :  { %620 = vst.msk [vmem:[#allocation4] sm:$0x3] %vm513_vm8, %v616_v29  ;;  %v1273_v30 = vpop.f32.mrb[7].mxu0 }
 0x1c6   :  { %1267 = vmatmul.mubr.msk.f32.vlgmr.msra.gmra.mrb[4].mxu1 %vm175_vm5, %v436_v47  ;;  %v1401_v47 = vmov 5  }
 0x1c7   :  { %1282 = vmatprep.mubr.msk.f32.mxu1 %vm1393_vm0, %v1394_v8  ;;  %1352 = vmatpush3.bf16.msra.mxu1 %v1351_v63 }
 0x1c8   :  { %1353 = vmatprep.subr.bf16.mxu1 %v1392_v0 }
 0x1cb   :  { %1355 = vmatpush3.bf16.msra.mxu1 %v1354_v6 }
 0x1cc   :  { %1362 = vmatprep.subr.bf16.mxu1 %v1392_v0 }
 0x247   :  { %v255_v51 = vpop.xlane.xlu0 %254 }
 0x248   :  { %v257_v52 = vmul.f32 0.03125, %v255_v51 }
 0x24a   :  { %v258_v53 = vsub.f32 %v248_v39, %v257_v52 }
 0x24c   :  { %v259_v54 = vmul.f32 %v258_v53, %v258_v53 }
 0x24e   :  { %v260_v55 = vsel %vm252_vm6, %v259_v54, 0.0 }
 0x24f   :  { %261 = vadd.xlane.f32.xlu0 %v260_v55 }
 0x299   :  { %v509_v7 = vpop.f32.mrb[4].mxu1 }
 0x29a   :  { %v514_v9 = vsel %vm513_vm8, %v509_v7, 0.0  ;;  %v1268_v10 = vpop.f32.mrb[5].mxu1 }
 0x29b   :  { %515 = vadd.xlane.f32.xlu0 %v514_v9 }
 0x2dc   :  { %v262_v12 = vpop.xlane.xlu0 %261 }
 0x2dd   :  { %v263_v13 = vmul.f32 0.03125, %v262_v12  ;;  %v968_v12 = vld [vmem:[%s1637_s1 + $0xb] sm:$0x3] }
 0x2df   :  { %v265_v14 = vadd.f32 1e-05, %v263_v13 }
 0x2e1   :  { %1386 = vrsqrt.f32 %v265_v14 }
 0x2eb   :  { %v1387_v16 = vpop.eup %1386 }
 0x2ec   :  { %v267_v17 = vmul.f32 %v1387_v16, %v258_v53  ;;  %v1402_v16 = vmov 6  }
 0x2ee   :  { %v273_v19 = vmul.f32 %v271_v15, %v267_v17  ;;  %v1048_v15 = vld [vmem:[%s1638_s2] sm:$0x7]  ;;  %s1403_s2 = smov 112  }
 0x2f0   :  { %v278_v20 = vadd.f32 %v276_v18, %v273_v19  ;;  %v1046_v19 = vld [vmem:[%s1637_s1 + $0xd] sm:$0x7] }
 0x2f2   :  { %v279_v21 = vmax.f32 %v278_v20, 0.0 }
 0x2f4   :  { %280 = vst.msk [vmem:[#allocation2] sm:$0x7] %vm252_vm6, %v279_v21 }
 0x2fb   :  { %v621_v0 = vld [vmem:[#allocation2] sm:$0x7] }
 0x2fc   :  { %v887_v22 = vld [vmem:[#allocation2] sm:$0x7]  ;;  %1283 = vmatmul.mubr.msk.f32.vlgmr.msra.gmra.mrb[6].mxu1 %vm22_vm1, %v621_v0  ;;  %1294 = vmatmul.mubr.msk.f32.vlgmr.msra.gmra.mrb[8].mxu0 %vm22_vm1, %v621_v0  ;;  %v773_v31 = vrot.slane %v621_v0, 5 }
 0x2fd   :  { %1304 = vmatpush3.msk.msra.mxu0 %vm778_vm9, %v887_v22  ;;  %1300 = vmatprep.mubr.msk.f32.mxu1 %vm1393_vm0, %v1394_v8 }
 0x2fe   :  { %1305 = vmatprep.mubr.msk.f32.mxu0 %vm1393_vm0, %v1394_v8  ;;  %1313 = vmatprep.subr.mxu0 %v1394_v8 }
 0x300   :  { %1306 = vmatmul.mubr.msk.f32.vlgmr.msra.gmra.mrb[10].mxu0 %vm889_vm14, %v888_v1 }
 0x301   :  { %1315 = vmatprep.mubr.msk.f32.mxu0 %vm1393_vm0, %v1394_v8 }
 0x328   :  { %v516_v23 = vpop.xlane.xlu0 %515 }
 0x329   :  { %v517_v24 = vmul.f32 0.03125, %v516_v23 }
 0x32b   :  { %v518_v25 = vsub.f32 %v509_v7, %v517_v24 }
 0x32d   :  { %v519_v26 = vmul.f32 %v518_v25, %v518_v25 }
 0x32f   :  { %v520_v27 = vsel %vm513_vm8, %v519_v26, 0.0 }
 0x330   :  { %521 = vadd.xlane.f32.xlu0 %v520_v27 }
 0x346   :  { %530 = vperm.xlu0 %1380, %v524_v28  }
 0x34a   :  { %1383 = vset.pattern.permute.xlu0 %v1401_v47 }
 0x3bd   :  { %v522_v48 = vpop.xlane.xlu0 %521 }
 0x3be   :  { %v523_v49 = vmul.f32 0.03125, %v522_v48 }
 0x3c0   :  { %v525_v50 = vadd.f32 1e-05, %v523_v49 }
 0x3c2   :  { %1388 = vrsqrt.f32 %v525_v50 }
 0x3c5   :  { %v531_v56 = vpop.permute.xlu0 %530 }
 0x3cc   :  { %v1389_v51 = vpop.eup %1388 }
 0x3cd   :  { %v527_v54 = vmul.f32 %v1389_v51, %v518_v25 }
 0x3cf   :  { %v695_v32 = vpop.f32.mrb[6].mxu1  ;;  %v769_v33 = vpop.f32.mrb[8].mxu0  ;;  %v533_v59 = vmul.f32 %v531_v56, %v527_v54 }
 0x3d0   :  { %v779_v34 = vsel %vm778_vm9, %v695_v32, %v773_v31  ;;  %v776_v35 = vrot.slane %v769_v33, 2  ;;  %v1284_v36 = vpop.f32.mrb[7].mxu1  ;;  %v1295_v37 = vpop.f32.mrb[9].mxu0 }
 0x3d2   :  { %v781_v38 = vsel %vm780_vm10, %v779_v34, %v776_v35 }
 0x3d3   :  { %v1363_v39 = vpack.c.bf16 %v776_v35, %v781_v38 }
 0x3d5   :  { %1365 = vmatpush3.bf16.msk.msra.mxu1 %vm1364_vm12, %v1363_v39 }
 0x3d6   :  { %1308 = vmatprep.subr.mxu1 %v1394_v8 }
 0x3d8   :  { %1301 = vmatmul.mubr.msk.f32.vlgmr.msra.gmra.mrb[8].mxu1 %vm783_vm13, %v782_v40 }
 0x3d9   :  { %1310 = vmatprep.mubr.msk.f32.mxu1 %vm1393_vm0, %v1394_v8  ;;  %v962_v8 = vpop.f32.mrb[10].mxu0  ;;  %vm1131_vm0 = vcmask 124928  }
 0x3da   :  { %966 = vst.msk [vmem:[#allocation4 + $0x2] sm:$0x3] %vm513_vm8, %v962_v8  ;;  %v1307_v14 = vpop.f32.mrb[11].mxu0 }
 0x4ab   :  { %v856_v42 = vpop.f32.mrb[8].mxu1 }
 0x4ac   :  { %v1302_v43 = vpop.f32.mrb[9].mxu1  ;;  %v860_v44 = vsel %vm513_vm8, %v856_v42, 0.0 }
 0x4ad   :  { %861 = vadd.xlane.f32.xlu1 %v860_v44 }
 0x4be   :  { %876 = vperm.xlu1 %1381, %v870_v45  }
 0x4c2   :  { %1382 = vset.pattern.permute.xlu1 %v1400_v46 }
 0x4c3   :  { %535 = vperm.xlu1 %1382, %v524_v28  }
 0x4c7   :  { %1384 = vset.pattern.permute.xlu1 %v1402_v16 }
 0x4c8   :  { %1051 = vperm.xlu1 %1384, %v1048_v15  }
 0x53a   :  { %v862_v52 = vpop.xlane.xlu1 %861 }
 0x53b   :  { %v863_v53 = vmul.f32 0.03125, %v862_v52 }
 0x53d   :  { %v864_v55 = vsub.f32 %v856_v42, %v863_v53 }
 0x53e   :  { %v877_v57 = vpop.permute.xlu1 %876 }
 0x53f   :  { %v865_v58 = vmul.f32 %v864_v55, %v864_v55 }
 0x541   :  { %v866_v60 = vsel %vm513_vm8, %v865_v58, 0.0 }
 0x542   :  { %867 = vadd.xlane.f32.xlu0 %v866_v60  ;;  %v536_v61 = vpop.permute.xlu1 %535 }
 0x543   :  { %v538_v62 = vadd.f32 %v536_v61, %v533_v59 }
 0x545   :  { %v539_v63 = vmax.f32 %v538_v62, 0.0 }
 0x547   :  { %540 = vst.msk [vmem:[#allocation3] sm:$0x3] %vm513_vm8, %v539_v63  ;;  %v1052_v21 = vpop.permute.xlu1 %1051 }
 0x558   :  { %881 = vperm.xlu0 %1383, %v870_v45  }
 0x55c   :  { %1385 = vset.pattern.permute.xlu0 %v1402_v16 }
 0x5cf   :  { %v868_v2 = vpop.xlane.xlu0 %867 }
 0x5d0   :  { %v869_v3 = vmul.f32 0.03125, %v868_v2 }
 0x5d2   :  { %v871_v4 = vadd.f32 1e-05, %v869_v3 }
 0x5d4   :  { %1390 = vrsqrt.f32 %v871_v4 }
 0x5d7   :  { %v882_v7 = vpop.permute.xlu0 %881 }
 0x5de   :  { %v1391_v5 = vpop.eup %1390 }
 0x5df   :  { %v873_v6 = vmul.f32 %v1391_v5, %v864_v55 }
 0x5e1   :  { %v879_v9 = vmul.f32 %v877_v57, %v873_v6 }
 0x5e3   :  { %v884_v10 = vadd.f32 %v882_v7, %v879_v9 }
 0x5e5   :  { %v885_v11 = vmax.f32 %v884_v10, 0.0 }
 0x5e7   :  { %886 = vst.msk [vmem:[#allocation3 + $0x2] sm:$0x3] %vm513_vm8, %v885_v11 }
 0x5ee   :  { %v967_v13 = vld [vmem:[#allocation3] sm:$0xf] }
 0x5ef   :  { %1309 = vmatpush3.msk.msra.mxu1 %vm172_vm2, %v967_v13 }
 0x5f0   :  { %1311 = vmatmul.mubr.msk.f32.vlgmr.msra.gmra.mrb[10].mxu1 %vm543_vm7, %v968_v12 }
 0x6c3   :  { %v1041_v17 = vpop.f32.mrb[10].mxu1 }
 0x6c4   :  { %1045 = vst.msk [vmem:[#allocation4 + $0x4] sm:$0x3] %vm513_vm8, %v1041_v17  ;;  %v1312_v18 = vpop.f32.mrb[11].mxu1 }
 0x6cb   :  { %v1047_v20 = vld [vmem:[#allocation4] sm:$0x3f] }
 0x6cc   :  { %1314 = vmatpush3.msk.msra.mxu0 %vm780_vm10, %v1047_v20 }
 0x6cd   :  { %1316 = vmatmul.mubr.msk.f32.vlgmr.msra.gmra.mrb[12].mxu0 %vm1054_vm15, %v1046_v19 }
 0x7a0   :  { %v1127_v0 = vpop.f32.mrb[12].mxu0 }
 0x7a1   :  { %v1128_v22 = vadd.f32 %v1127_v0, %v1052_v21  ;;  %v1317_v23 = vpop.f32.mrb[13].mxu0 }
 0x7a3   :  { %1134 = vrot.lane.b32.xlu1 %v1128_v22, %s1403_s2  ;;  %1132 = vst.msk [vmem:[%s1639_s4] sm:$0x7] %vm1131_vm0, %v1128_v22 }
 0x815   :  { %v1135_v24 = vpop.permute.xlu1 %1134 }
 0x816   :  { %1163 = vst.msk [vmem:[%s1639_s4 + $0x4] sm:$0x7] %vm1131_vm0, %v1135_v24 }

</bundles_post_ra>
